<compile_context>
chip_gen: v5e
topology: v5e:2x2
jax: 0.10.0
libtpu: 0.0.40
codegen_flags: <defaults>
</compile_context>

<pallas_src>
import functools

import jax
import jax.numpy as jnp
from jax.experimental import pallas as pl
from jax.experimental.pallas import tpu as pltpu

_LANE = 128     # lane width: hidden dims padded to a multiple of this
_SUBLANE = 8    # sublane width: batch tile must be a multiple of this


def _round_up(x, m):
    return (x + m - 1) // m * m


def _pick_tm(n, tm_max):
    """Batch tile: big (amortize ~0.35us/step), multiple of 8, >=2 grid steps if possible."""
    n_sub = _round_up(n, _SUBLANE)
    tm = min(tm_max, n_sub)
    if n_sub >= 2 * _SUBLANE:
        # Cap so the grid has at least 2 steps -> v7x megacore sharding has work for both TCs.
        half = _round_up((n_sub + 1) // 2, _SUBLANE)
        tm = min(tm, half)
    return max(_SUBLANE, _round_up(tm, _SUBLANE))


def _sigmoid_eup(z):
    # exp on the EUP + approx reciprocal on the EUP (keeps the divide off the VALU).
    return pl.reciprocal(1.0 + jnp.exp(-z), approx=True)


def _fused_sae_kernel(num_enc, x_ref, *refs):
    """refs = (w_0, b_0, ..., w_{E-1}, b_{E-1}, w_proj_row, b_proj, o_ref).

    w_i  : bf16 [D_in(_pad), D_out_pad]  (pre-transposed, zero-padded)
    b_i  : f32  [1, D_out_pad]
    w_proj_row : f32 [1, D_last_pad]     (projection done as VPU mul + lane reduce)
    b_proj     : f32 [1, 1]
    The running activation stays in vregs/VMEM for the whole chain (no HBM round-trip).
    """
    o_ref = refs[-1]
    wproj_ref = refs[-3]
    bproj_ref = refs[-2]

    act = x_ref[...].astype(jnp.float32)                    # [TM, D0]
    for li in range(num_enc):                                # statically unrolled
        w = refs[2 * li][...]                                # bf16 [Din, Dout_pad]
        b = refs[2 * li + 1][...]                            # f32  [1, Dout_pad]
        z = jnp.dot(act.astype(jnp.bfloat16), w,             # bf16 MXU, f32 accumulate
                    preferred_element_type=jnp.float32) + b
        act = _sigmoid_eup(z)                                # padded lanes -> 0.5 (cancelled
                                                             # by zero rows of next weight)
    # Final projection to 1 unit: elementwise multiply (VPU) + lane reduce (XLU).
    z = jnp.sum(act * wproj_ref[...], axis=-1, keepdims=True) + bproj_ref[...]   # [TM, 1]
    o_ref[...] = _sigmoid_eup(z)


def init_stacked_autoencoder(key, size):
    """Deterministic params mirroring the module's shapes (torch [out, in] layout).

    Decoder weights are unused in the PreTrain=False forward path and omitted.
    """
    params = {"enc_w": [], "enc_b": []}
    for i in range(1, len(size)):
        key, kw, kb = jax.random.split(key, 3)
        d_in, d_out = size[i - 1], size[i]
        bound = 1.0 / jnp.sqrt(d_in)
        params["enc_w"].append(
            jax.random.uniform(kw, (d_out, d_in), jnp.float32, -bound, bound))
        params["enc_b"].append(
            jax.random.uniform(kb, (d_out,), jnp.float32, -bound, bound))
    key, kw, kb = jax.random.split(key, 3)
    d_in = size[-1]
    bound = 1.0 / jnp.sqrt(d_in)
    params["proj_w"] = jax.random.uniform(kw, (1, d_in), jnp.float32, -bound, bound)
    params["proj_b"] = jax.random.uniform(kb, (1,), jnp.float32, -bound, bound)
    return params


def prepare_sae_params(params):
    """One-time layout prep (hoisted out of the per-call forward):
    transpose encoder weights to [D_in, D_out], zero-pad output dims to 128 lanes,
    cast MXU operands to bf16. Layer-0 contraction dim stays at the raw d_in so the
    input x needs no lane padding."""
    ws = list(params["enc_w"])
    bs = list(params["enc_b"])
    d_in0 = int(ws[0].shape[1])
    prep = {"enc_w": [], "enc_b": [], "d_in": d_in0}

    d_prev = d_in0                                           # raw input dim for layer 0
    for w, b in zip(ws, bs):
        d_out, d_i = int(w.shape[0]), int(w.shape[1])
        d_out_pad = _round_up(d_out, _LANE)
        wt = jnp.zeros((d_prev, d_out_pad), jnp.float32)
        wt = wt.at[:d_i, :d_out].set(jnp.asarray(w, jnp.float32).T)
        bb = jnp.zeros((1, d_out_pad), jnp.float32)
        bb = bb.at[:, :d_out].set(jnp.asarray(b, jnp.float32))
        prep["enc_w"].append(wt.astype(jnp.bfloat16))        # bf16 MXU operand
        prep["enc_b"].append(bb)                             # bias stays f32
        d_prev = d_out_pad

    pw = jnp.asarray(params["proj_w"], jnp.float32)          # [1, size[-1]]
    pb = jnp.asarray(params["proj_b"], jnp.float32)
    d_last = int(pw.shape[1])
    wrow = jnp.zeros((1, d_prev), jnp.float32).at[:, :d_last].set(pw)
    prep["proj_w"] = wrow                                    # f32: projection is VPU work
    prep["proj_b"] = pb.reshape(1, 1)
    return prep


def stacked_autoencoder_forward(prep, x, *, tm=1024):
    """Equivalent of StackedAutoEncoder.forward(X, NoL, PreTrain=False).

    One fused pallas_call over the whole layer chain, tiled over the batch only.
    Input x is consumed at its natural width (no 128-lane host padding); output is (n, 1).
    """
    n, d_in = x.shape
    assert d_in == prep["d_in"], (d_in, prep["d_in"])
    x = jnp.asarray(x, jnp.float32)                          # non-f32 callers are upcast

    tm = _pick_tm(n, tm)
    n_pad = _round_up(n, tm)
    if n_pad != n:
        x = jnp.pad(x, ((0, n_pad - n), (0, 0)))             # row pad only

    num_enc = len(prep["enc_w"])

    # Input: full-extent last dim (== array dim, so no 128-divisibility requirement).
    in_specs = [pl.BlockSpec((tm, d_in), lambda i: (i, 0))]
    inputs = [x]
    for w, b in zip(prep["enc_w"], prep["enc_b"]):
        # Constant index_map -> weight/bias tiles stay resident in VMEM across batch tiles.
        # (For large hidden dims on v7x, consider pipeline_mode=pl.Buffered(1) here.)
        in_specs.append(pl.BlockSpec(tuple(w.shape), lambda i: (0, 0)))
        in_specs.append(pl.BlockSpec(tuple(b.shape), lambda i: (0, 0)))
        inputs.extend((w, b))
    in_specs.append(pl.BlockSpec(tuple(prep["proj_w"].shape), lambda i: (0, 0)))
    in_specs.append(pl.BlockSpec(tuple(prep["proj_b"].shape), lambda i: (0, 0)))
    inputs.extend((prep["proj_w"], prep["proj_b"]))

    out = pl.pallas_call(
        functools.partial(_fused_sae_kernel, num_enc),
        out_shape=jax.ShapeDtypeStruct((n_pad, 1), jnp.float32),
        grid=(n_pad // tm,),
        in_specs=in_specs,
        out_specs=pl.BlockSpec((tm, 1), lambda i: (i, 0)),    # narrow output: 128x fewer
        compiler_params=pltpu.CompilerParams(                 # write bytes vs padded slab
            dimension_semantics=("parallel",)),               # megacore sharding on v7x
    )(*inputs)

    return out[:n] if n_pad != n else out


if __name__ == "__main__":
    size = [16, 32, 16, 8]   # dim_X then hidden dims; proj maps size[-1] -> 1
    batch = 8

    key = jax.random.PRNGKey(0)
    key, kx = jax.random.split(key)
    x = jax.random.normal(kx, (batch, size[0]), jnp.float32)

    params = init_stacked_autoencoder(key, size)
    prep = prepare_sae_params(params)        # one-time layout prep (hoisted out of forward)

    out = stacked_autoencoder_forward(prep, x)
    out = jax.block_until_ready(out)
    assert out.shape == (batch, 1), out.shape

    # Pure-JAX f32 reference of the module's forward (PreTrain=False).
    ref = x
    for w, b in zip(params["enc_w"], params["enc_b"]):
        ref = jax.nn.sigmoid(ref @ w.T + b)
    ref = jax.nn.sigmoid(ref @ params["proj_w"].T + params["proj_b"])
    # Tolerance loosened for bf16 MXU operands + approx-reciprocal sigmoid.
    assert jnp.allclose(out, ref, atol=2e-2), (
        "mismatch vs reference", jnp.max(jnp.abs(out - ref)))

    print("KERNEL_OK")
</pallas_src>

<mosaic_0001>
module attributes {stable_mosaic.version = 11 : i64} {
  func.func @_fused_sae_kernel(%arg0: i32, %arg1: memref<8x16xf32, #tpu.memory_space<vmem>>, %arg2: memref<16x128xbf16, #tpu.memory_space<vmem>>, %arg3: memref<1x128xf32, #tpu.memory_space<vmem>>, %arg4: memref<128x128xbf16, #tpu.memory_space<vmem>>, %arg5: memref<1x128xf32, #tpu.memory_space<vmem>>, %arg6: memref<128x128xbf16, #tpu.memory_space<vmem>>, %arg7: memref<1x128xf32, #tpu.memory_space<vmem>>, %arg8: memref<1x128xf32, #tpu.memory_space<vmem>>, %arg9: memref<1x1xf32, #tpu.memory_space<vmem>>, %arg10: memref<8x1xf32, #tpu.memory_space<vmem>>) attributes {dimension_semantics = [#tpu.dimension_semantics<parallel>], iteration_bounds = array<i64: 1>, scalar_prefetch = 0 : i64, scratch_operands = 0 : i64, tpu.core_type = #tpu.core_type<tc>, window_params = [{transform_indices = @transform_0, window_bounds = array<i64: 8, 16>}, {pipeline_mode = #tpu.pipeline_mode<synchronous>, transform_indices = @transform_1, window_bounds = array<i64: 16, 128>}, {pipeline_mode = #tpu.pipeline_mode<synchronous>, transform_indices = @transform_2, window_bounds = array<i64: 1, 128>}, {pipeline_mode = #tpu.pipeline_mode<synchronous>, transform_indices = @transform_3, window_bounds = array<i64: 128, 128>}, {pipeline_mode = #tpu.pipeline_mode<synchronous>, transform_indices = @transform_4, window_bounds = array<i64: 1, 128>}, {pipeline_mode = #tpu.pipeline_mode<synchronous>, transform_indices = @transform_5, window_bounds = array<i64: 128, 128>}, {pipeline_mode = #tpu.pipeline_mode<synchronous>, transform_indices = @transform_6, window_bounds = array<i64: 1, 128>}, {pipeline_mode = #tpu.pipeline_mode<synchronous>, transform_indices = @transform_7, window_bounds = array<i64: 1, 128>}, {pipeline_mode = #tpu.pipeline_mode<synchronous>, transform_indices = @transform_8, window_bounds = array<i64: 1, 1>}, {transform_indices = @transform_9, window_bounds = array<i64: 8, 1>}]} {
    %c0 = arith.constant 0 : index
    %c0_0 = arith.constant 0 : index
    %0 = vector.load %arg1[%c0, %c0_0] : memref<8x16xf32, #tpu.memory_space<vmem>>, vector<8x16xf32>
    %c0_1 = arith.constant 0 : index
    %c0_2 = arith.constant 0 : index
    %1 = vector.load %arg2[%c0_1, %c0_2] : memref<16x128xbf16, #tpu.memory_space<vmem>>, vector<16x128xbf16>
    %c0_3 = arith.constant 0 : index
    %c0_4 = arith.constant 0 : index
    %2 = vector.load %arg3[%c0_3, %c0_4] : memref<1x128xf32, #tpu.memory_space<vmem>>, vector<1x128xf32>
    %3 = arith.truncf %0 : vector<8x16xf32> to vector<8x16xbf16>
    %cst = arith.constant dense<0.000000e+00> : vector<8x128xf32>
    %4 = tpu.matmul %3, %1, %cst {dimension_numbers = #tpu.dot_dimension_numbers<[1], [0], [0], [1], [0, 0, 1, 1], [], []>} : vector<8x16xbf16>, vector<16x128xbf16>, vector<8x128xf32> -> vector<8x128xf32>
    %5 = vector.broadcast %2 : vector<1x128xf32> to vector<8x128xf32>
    %6 = arith.addf %4, %5 : vector<8x128xf32>
    %cst_5 = arith.constant 0.000000e+00 : f32
    %7 = vector.broadcast %cst_5 : f32 to vector<8x128xf32>
    %8 = arith.subf %7, %6 : vector<8x128xf32>
    %9 = math.exp %8 : vector<8x128xf32>
    %cst_6 = arith.constant 1.000000e+00 : f32
    %10 = vector.broadcast %cst_6 : f32 to vector<8x128xf32>
    %11 = arith.addf %10, %9 : vector<8x128xf32>
    %12 = tpu.reciprocal %11 {approx = true} : vector<8x128xf32> -> vector<8x128xf32>
    %c0_7 = arith.constant 0 : index
    %c0_8 = arith.constant 0 : index
    %13 = vector.load %arg4[%c0_7, %c0_8] : memref<128x128xbf16, #tpu.memory_space<vmem>>, vector<128x128xbf16>
    %c0_9 = arith.constant 0 : index
    %c0_10 = arith.constant 0 : index
    %14 = vector.load %arg5[%c0_9, %c0_10] : memref<1x128xf32, #tpu.memory_space<vmem>>, vector<1x128xf32>
    %15 = arith.truncf %12 : vector<8x128xf32> to vector<8x128xbf16>
    %cst_11 = arith.constant dense<0.000000e+00> : vector<8x128xf32>
    %16 = tpu.matmul %15, %13, %cst_11 {dimension_numbers = #tpu.dot_dimension_numbers<[1], [0], [0], [1], [0, 0, 1, 1], [], []>} : vector<8x128xbf16>, vector<128x128xbf16>, vector<8x128xf32> -> vector<8x128xf32>
    %17 = vector.broadcast %14 : vector<1x128xf32> to vector<8x128xf32>
    %18 = arith.addf %16, %17 : vector<8x128xf32>
    %cst_12 = arith.constant 0.000000e+00 : f32
    %19 = vector.broadcast %cst_12 : f32 to vector<8x128xf32>
    %20 = arith.subf %19, %18 : vector<8x128xf32>
    %21 = math.exp %20 : vector<8x128xf32>
    %cst_13 = arith.constant 1.000000e+00 : f32
    %22 = vector.broadcast %cst_13 : f32 to vector<8x128xf32>
    %23 = arith.addf %22, %21 : vector<8x128xf32>
    %24 = tpu.reciprocal %23 {approx = true} : vector<8x128xf32> -> vector<8x128xf32>
    %c0_14 = arith.constant 0 : index
    %c0_15 = arith.constant 0 : index
    %25 = vector.load %arg6[%c0_14, %c0_15] : memref<128x128xbf16, #tpu.memory_space<vmem>>, vector<128x128xbf16>
    %c0_16 = arith.constant 0 : index
    %c0_17 = arith.constant 0 : index
    %26 = vector.load %arg7[%c0_16, %c0_17] : memref<1x128xf32, #tpu.memory_space<vmem>>, vector<1x128xf32>
    %27 = arith.truncf %24 : vector<8x128xf32> to vector<8x128xbf16>
    %cst_18 = arith.constant dense<0.000000e+00> : vector<8x128xf32>
    %28 = tpu.matmul %27, %25, %cst_18 {dimension_numbers = #tpu.dot_dimension_numbers<[1], [0], [0], [1], [0, 0, 1, 1], [], []>} : vector<8x128xbf16>, vector<128x128xbf16>, vector<8x128xf32> -> vector<8x128xf32>
    %29 = vector.broadcast %26 : vector<1x128xf32> to vector<8x128xf32>
    %30 = arith.addf %28, %29 : vector<8x128xf32>
    %cst_19 = arith.constant 0.000000e+00 : f32
    %31 = vector.broadcast %cst_19 : f32 to vector<8x128xf32>
    %32 = arith.subf %31, %30 : vector<8x128xf32>
    %33 = math.exp %32 : vector<8x128xf32>
    %cst_20 = arith.constant 1.000000e+00 : f32
    %34 = vector.broadcast %cst_20 : f32 to vector<8x128xf32>
    %35 = arith.addf %34, %33 : vector<8x128xf32>
    %36 = tpu.reciprocal %35 {approx = true} : vector<8x128xf32> -> vector<8x128xf32>
    %c0_21 = arith.constant 0 : index
    %c0_22 = arith.constant 0 : index
    %37 = vector.load %arg8[%c0_21, %c0_22] : memref<1x128xf32, #tpu.memory_space<vmem>>, vector<1x128xf32>
    %38 = vector.broadcast %37 : vector<1x128xf32> to vector<8x128xf32>
    %39 = arith.mulf %36, %38 : vector<8x128xf32>
    %cst_23 = arith.constant dense<0.000000e+00> : vector<8xf32>
    %40 = vector.multi_reduction <add>, %39, %cst_23 [1] : vector<8x128xf32> to vector<8xf32>
    %41 = vector.shape_cast %40 : vector<8xf32> to vector<8x1xf32>
    %c0_24 = arith.constant 0 : index
    %c0_25 = arith.constant 0 : index
    %42 = vector.load %arg9[%c0_24, %c0_25] : memref<1x1xf32, #tpu.memory_space<vmem>>, vector<1x1xf32>
    %43 = vector.broadcast %42 : vector<1x1xf32> to vector<8x1xf32>
    %44 = arith.addf %41, %43 : vector<8x1xf32>
    %cst_26 = arith.constant 0.000000e+00 : f32
    %45 = vector.broadcast %cst_26 : f32 to vector<8x1xf32>
    %46 = arith.subf %45, %44 : vector<8x1xf32>
    %47 = math.exp %46 : vector<8x1xf32>
    %cst_27 = arith.constant 1.000000e+00 : f32
    %48 = vector.broadcast %cst_27 : f32 to vector<8x1xf32>
    %49 = arith.addf %48, %47 : vector<8x1xf32>
    %50 = tpu.reciprocal %49 {approx = true} : vector<8x1xf32> -> vector<8x1xf32>
    %c0_28 = arith.constant 0 : index
    %c0_29 = arith.constant 0 : index
    %51 = vector.load %arg10[%c0_28, %c0_29] : memref<8x1xf32, #tpu.memory_space<vmem>>, vector<8x1xf32>
    tpu.vector_store %arg10[%c0_28, %c0_29], %50 {strides = array<i32>} : memref<8x1xf32, #tpu.memory_space<vmem>>, vector<8x1xf32>,
    return
  }
  func.func @transform_0(%arg0: i32) -> (i32, i32) {
    %c0_i32 = arith.constant 0 : i32
    %c0_i32_0 = arith.constant 0 : i32
    return %arg0, %c0_i32 : i32, i32
  }
  func.func @transform_1(%arg0: i32) -> (i32, i32) {
    %c0_i32 = arith.constant 0 : i32
    %c0_i32_0 = arith.constant 0 : i32
    %c0_i32_1 = arith.constant 0 : i32
    return %c0_i32, %c0_i32_0 : i32, i32
  }
  func.func @transform_2(%arg0: i32) -> (i32, i32) {
    %c0_i32 = arith.constant 0 : i32
    %c0_i32_0 = arith.constant 0 : i32
    %c0_i32_1 = arith.constant 0 : i32
    return %c0_i32, %c0_i32_0 : i32, i32
  }
  func.func @transform_3(%arg0: i32) -> (i32, i32) {
    %c0_i32 = arith.constant 0 : i32
    %c0_i32_0 = arith.constant 0 : i32
    %c0_i32_1 = arith.constant 0 : i32
    return %c0_i32, %c0_i32_0 : i32, i32
  }
  func.func @transform_4(%arg0: i32) -> (i32, i32) {
    %c0_i32 = arith.constant 0 : i32
    %c0_i32_0 = arith.constant 0 : i32
    %c0_i32_1 = arith.constant 0 : i32
    return %c0_i32, %c0_i32_0 : i32, i32
  }
  func.func @transform_5(%arg0: i32) -> (i32, i32) {
    %c0_i32 = arith.constant 0 : i32
    %c0_i32_0 = arith.constant 0 : i32
    %c0_i32_1 = arith.constant 0 : i32
    return %c0_i32, %c0_i32_0 : i32, i32
  }
  func.func @transform_6(%arg0: i32) -> (i32, i32) {
    %c0_i32 = arith.constant 0 : i32
    %c0_i32_0 = arith.constant 0 : i32
    %c0_i32_1 = arith.constant 0 : i32
    return %c0_i32, %c0_i32_0 : i32, i32
  }
  func.func @transform_7(%arg0: i32) -> (i32, i32) {
    %c0_i32 = arith.constant 0 : i32
    %c0_i32_0 = arith.constant 0 : i32
    %c0_i32_1 = arith.constant 0 : i32
    return %c0_i32, %c0_i32_0 : i32, i32
  }
  func.func @transform_8(%arg0: i32) -> (i32, i32) {
    %c0_i32 = arith.constant 0 : i32
    %c0_i32_0 = arith.constant 0 : i32
    %c0_i32_1 = arith.constant 0 : i32
    return %c0_i32, %c0_i32_0 : i32, i32
  }
  func.func @transform_9(%arg0: i32) -> (i32, i32) {
    %c0_i32 = arith.constant 0 : i32
    %c0_i32_0 = arith.constant 0 : i32
    return %arg0, %c0_i32 : i32, i32
  }
}

</mosaic_0001>

<bundles_post_ra>
// kernel: tpu_custom_call.1
= control target key start
LH: loop header
LB: loop body
LE: loop exit
PB: predicated region body
PF: predicated region fallthrough
CT: control target
= control target key end

     0   :  { %s633_s0 = inlined_call_operand.hbm [shape: f32[8,16], index: 0, kind: input, shape index: {}]   ;;  %s634_s1 = inlined_call_operand.hbm [shape: bf16[16,128], index: 1, kind: input, shape index: {}]   ;;  %s635_s2 = inlined_call_operand.vmem [shape: f32[1,128], index: 2, kind: input, shape index: {}]   ;;  %s636_s3 = inlined_call_operand.hbm [shape: bf16[128,128], index: 3, kind: input, shape index: {}]   ;;  %s637_s4 = inlined_call_operand.vmem [shape: f32[1,128], index: 4, kind: input, shape index: {}]   ;;  %s638_s5 = inlined_call_operand.hbm [shape: bf16[128,128], index: 5, kind: input, shape index: {}]   ;;  %s639_s6 = inlined_call_operand.vmem [shape: f32[1,128], index: 6, kind: input, shape index: {}]   ;;  %s640_s7 = inlined_call_operand.vmem [shape: f32[1,128], index: 7, kind: input, shape index: {}]   ;;  %s641_s8 = inlined_call_operand.<no memory space> [shape: f32[1,1], index: 8, kind: input, shape index: {}]   ;;  %s642_s9 = inlined_call_operand.vmem [shape: f32[8,1], index: 9, kind: output, shape index: {}]  }
   0x1   :  { %v14_v0 = vstv %s641_s8 }
   0x2   :  { %15 = vst [vmem:[#allocation2] sm:$0x1] %v14_v0 }
   0x3   :  { %16 = vsyncpa [#allocation4], 0 }
   0x4   :  { %17 = vsyncpa [#allocation6], 0  ;;  %s34_s13 = sshll.u32 %s634_s1, 4  ;;  %s35_s13 = int_to_ptr.hbm [resolvable:$true] %s34_s13 }
   0x5   :  { %18 = vsyncpa [#allocation9], 0  ;;  %s547_s14 = smov [#allocation5]   ;;  %s24_s18 = sshll.u32 %s633_s0, 4  ;;  %s25_s18 = int_to_ptr.hbm [resolvable:$true] %s24_s18 }
   0x6   :  { %s36_s15 = sshll.u32 %s547_s14, 4  ;;  %s548_s19 = smov 64   ;;  %s37_s15 = int_to_ptr.vmem [resolvable:$true] %s36_s15 }
   0x7   :  { %s549_s20 = smov 4   ;;  %s550_s8 = smov [#allocation3]  }
   0x8   :  { %42 = dma.hbm_to_vmem [thread:$0]  %s35_s13, 128, %s37_s15, [#allocation6], %s548_s19, %s548_s19, %s549_s20  }
   0x9   :  { %s26_s21 = sshll.u32 %s550_s8, 4  ;;  %s49_s24 = sshll.u32 %s636_s3, 4  ;;  %s27_s21 = int_to_ptr.vmem [resolvable:$true] %s26_s21  ;;  %s50_s24 = int_to_ptr.hbm [resolvable:$true] %s49_s24 }
   0xa   :  { %29 = dma.hbm_to_vmem [thread:$0]  %s25_s18, 128, %s27_s21, [#allocation4]  }
   0xb   :  { %s64_s26 = sshll.u32 %s638_s5, 4  ;;  %s551_s27 = smov [#allocation7]   ;;  %s65_s26 = int_to_ptr.hbm [resolvable:$true] %s64_s26 }
   0xc   :  { %s51_s28 = sshll.u32 %s551_s27, 4  ;;  %s552_s0 = smov [#allocation8]   ;;  %s52_s28 = int_to_ptr.vmem [resolvable:$true] %s51_s28 }
   0xd   :  { %57 = dma.hbm_to_vmem [thread:$0]  %s50_s24, 1024, %s52_s28, [#allocation6], %s548_s19, %s548_s19, %s549_s20  }
   0xe   :  { %s66_s29 = sshll.u32 %s552_s0, 4  ;;  %s67_s29 = int_to_ptr.vmem [resolvable:$true] %s66_s29 }
   0xf   :  { %72 = dma.hbm_to_vmem [thread:$0]  %s65_s26, 1024, %s67_s29, [#allocation9], %s548_s19, %s548_s19, %s549_s20  }
  0x10   :  { %541 = dma.done.wait [#allocation4], 128  }
  0x11   :  { %542 = vsyncadd [#allocation4], 4294967168 }
  0x12   :  { %543 = dma.done.wait [#allocation6], 1152  }
  0x13   :  { %544 = vsyncadd [#allocation6], 4294966144 }
  0x14   :  { %545 = dma.done.wait [#allocation9], 1024  }
  0x15   :  { %546 = vsyncadd [#allocation9], 4294966272  ;;  %v401_v1 = vld [vmem:[#allocation5] sm:$0xff]  ;;  %v96_v2 = vld [vmem:[#allocation3] sm:$0xff]  ;;  %vm110_vm0 = vcmask 130048   ;;  %vm323_vm1 = vcmask 7168  }
  0x16   :  { %v409_v3 = vld [vmem:[#allocation7 + $0x38] sm:$0xff]  ;;  %v100_v4 = vpack.c.bf16 %v96_v2, %v96_v2  ;;  %v408_v5 = vld [vmem:[#allocation7 + $0x30] sm:$0xff]  ;;  %121 = vmatpush.bf16.msra.mxu0 %v401_v1  ;;  %v407_v6 = vld [vmem:[#allocation7 + $0x28] sm:$0xff] }
  0x17   :  { %201 = vmatpush.bf16.msra.mxu1 %v409_v3  ;;  %v406_v7 = vld [vmem:[#allocation7 + $0x20] sm:$0xff]  ;;  %v405_v8 = vld [vmem:[#allocation7 + $0x18] sm:$0xff]  ;;  %v404_v9 = vld [vmem:[#allocation7 + $0x10] sm:$0xff] }
  0x18   :  { %v403_v10 = vld [vmem:[#allocation7 + $0x8] sm:$0xff]  ;;  %v402_v11 = vld [vmem:[#allocation7] sm:$0xff]  ;;  %v417_v12 = vld [vmem:[#allocation8 + $0x38] sm:$0xff] }
  0x19   :  { %336 = vmatmul.msk.bf16.vlgmr.msra.gmra.mxu0 %vm110_vm0, %v100_v4  ;;  %288 = vmatpush.bf16.msra.mxu2 %v417_v12  ;;  %v416_v13 = vld [vmem:[#allocation8 + $0x30] sm:$0xff]  ;;  %v424_v14 = vld [vmem:[%s635_s2] ss:$0 sm:$0xff]  ;;  %v414_v25 = vld [vmem:[#allocation8 + $0x20] sm:$0xff] }
  0x1a   :  { %v415_v24 = vld [vmem:[#allocation8 + $0x28] sm:$0xff]  ;;  %v413_v26 = vld [vmem:[#allocation8 + $0x18] sm:$0xff]  ;;  %v412_v27 = vld [vmem:[#allocation8 + $0x10] sm:$0xff] }
  0x1b   :  { %202 = vmatpush.bf16.msra.mxu1 %v408_v5  ;;  %v411_v28 = vld [vmem:[#allocation8 + $0x8] sm:$0xff]  ;;  %v410_v29 = vld [vmem:[#allocation8] sm:$0xff] }
  0x1c   :  { %v425_v30 = vld [vmem:[%s637_s4] ss:$0 sm:$0xff] }
  0x1d   :  { %289 = vmatpush.bf16.msra.mxu2 %v416_v13  ;;  %v426_v40 = vld [vmem:[%s639_s6] ss:$0 sm:$0xff] }
  0x1e   :  { %v427_v48 = vld [vmem:[%s640_s7] ss:$0 sm:$0xff] }
  0x1f   :  { %203 = vmatpush.bf16.msra.mxu1 %v407_v6  ;;  %v428_v51 = vld [vmem:[#allocation2] ss:$0 sm:$0xff] }
  0x21   :  { %290 = vmatpush.bf16.msra.mxu2 %v415_v24 }
  0x23   :  { %204 = vmatpush.bf16.msra.mxu1 %v406_v7 }
  0x25   :  { %291 = vmatpush.bf16.msra.mxu2 %v414_v25 }
  0x27   :  { %205 = vmatpush.bf16.msra.mxu1 %v405_v8 }
  0x29   :  { %292 = vmatpush.bf16.msra.mxu2 %v413_v26 }
  0x2b   :  { %206 = vmatpush.bf16.msra.mxu1 %v404_v9 }
  0x2d   :  { %293 = vmatpush.bf16.msra.mxu2 %v412_v27 }
  0x2f   :  { %207 = vmatpush.bf16.msra.mxu1 %v403_v10 }
  0x31   :  { %294 = vmatpush.bf16.msra.mxu2 %v411_v28 }
  0x33   :  { %208 = vmatpush.bf16.msra.mxu1 %v402_v11 }
  0x35   :  { %295 = vmatpush.bf16.msra.mxu2 %v410_v29 }
  0x96   :  { %v123_v15 = vpop.f32.mrf.mxu0 }
  0x97   :  { %v124_v16 = vadd.f32 %v424_v14, %v123_v15 }
  0x99   :  { %v127_v17 = vsub.f32 0.0, %v124_v16 }
  0x9b   :  { %v128_v18 = vmul.f32 1.442695, %v127_v17 }
  0x9d   :  { %429 = vpow2.f32 %v128_v18 }
  0x9e   :  { %v125_v19 = vpop.f32.mrf.mxu0 }
  0xa3   :  { %v430_v20 = vpop.eup %429 }
  0xa4   :  { %v130_v21 = vadd.f32 1.0, %v430_v20 }
  0xa6   :  { %431 = vrcp.f32 %v130_v21 }
  0xac   :  { %v432_v22 = vpop.eup %431 }
  0xad   :  { %v149_v23 = vpack.c.bf16 %v432_v22, %v432_v22 }
  0xaf   :  { %209 = vmatmul.bf16.vlgmr.msra.gmra.mxu1 %v149_v23 }
 0x12c   :  { %v210_v31 = vpop.f32.mrf.mxu1 }
 0x12d   :  { %v211_v32 = vadd.f32 %v425_v30, %v210_v31 }
 0x12f   :  { %v214_v33 = vsub.f32 0.0, %v211_v32 }
 0x131   :  { %v215_v34 = vmul.f32 1.442695, %v214_v33 }
 0x133   :  { %433 = vpow2.f32 %v215_v34 }
 0x134   :  { %v212_v35 = vpop.f32.mrf.mxu1 }
 0x139   :  { %v434_v36 = vpop.eup %433 }
 0x13a   :  { %v217_v37 = vadd.f32 1.0, %v434_v36 }
 0x13c   :  { %435 = vrcp.f32 %v217_v37 }
 0x142   :  { %v436_v38 = vpop.eup %435 }
 0x143   :  { %v236_v39 = vpack.c.bf16 %v436_v38, %v436_v38 }
 0x145   :  { %296 = vmatmul.bf16.vlgmr.msra.gmra.mxu2 %v236_v39 }
 0x1c8   :  { %v297_v41 = vpop.f32.mrf.mxu2 }
 0x1c9   :  { %v298_v42 = vadd.f32 %v426_v40, %v297_v41 }
 0x1cb   :  { %v301_v43 = vsub.f32 0.0, %v298_v42 }
 0x1cd   :  { %v302_v44 = vmul.f32 1.442695, %v301_v43 }
 0x1cf   :  { %437 = vpow2.f32 %v302_v44 }
 0x1d0   :  { %v299_v45 = vpop.f32.mrf.mxu2 }
 0x1d5   :  { %v438_v46 = vpop.eup %437 }
 0x1d6   :  { %v304_v47 = vadd.f32 1.0, %v438_v46 }
 0x1d8   :  { %439 = vrcp.f32 %v304_v47 }
 0x1de   :  { %v440_v49 = vpop.eup %439 }
 0x1df   :  { %v310_v50 = vmul.f32 %v440_v49, %v427_v48 }
 0x1e1   :  { %311 = vadd.xlane.f32.xlu0 %v310_v50 }
 0x254   :  { %v312_v52 = vpop.xlane.xlu0 %311 }
 0x255   :  { %v317_v53 = vadd.f32 %v428_v51, %v312_v52 }
 0x257   :  { %v318_v54 = vsub.f32 0.0, %v317_v53 }
 0x259   :  { %v319_v55 = vmul.f32 1.442695, %v318_v54 }
 0x25b   :  { %441 = vpow2.f32 %v319_v55 }
 0x261   :  { %v442_v56 = vpop.eup %441 }
 0x262   :  { %v321_v57 = vadd.f32 1.0, %v442_v56 }
 0x264   :  { %443 = vrcp.f32 %v321_v57 }
 0x26a   :  { %v444_v58 = vpop.eup %443 }
 0x26b   :  { %324 = vst.msk [vmem:[%s642_s9] sm:$0xff] %vm323_vm1, %v444_v58 }
 0x26c   :  { %329 = vsyncpa [#allocation4], 1 }
 0x26d   :  { %330 = vsyncpa [#allocation6], 1 }
 0x26e   :  { %331 = vsyncpa [#allocation9], 1 }

</bundles_post_ra>
